<compile_context>
chip_gen: v7x
topology: tpu7x:2x2x1
jax: 0.10.0
libtpu: 0.0.40
codegen_flags: <defaults>
</compile_context>

<pallas_src>
import functools

import jax
import jax.numpy as jnp
from jax import lax
from jax.experimental import pallas as pl
from jax.experimental.pallas import tpu as pltpu


# ---------------------------------------------------------------------------
# One-time probe of pltpu.roll's lane-rotation direction.
# ---------------------------------------------------------------------------
def _roll_probe_kernel(x_ref, o_ref):
    o_ref[...] = pltpu.roll(x_ref[...], 1, axis=1)


@functools.lru_cache(maxsize=1)
def _roll_matches_jnp() -> bool:
    """True iff pltpu.roll(x, s)[i] == x[(i - s) % n] (jnp.roll convention)."""
    n = 128
    x = jnp.broadcast_to(jnp.arange(n, dtype=jnp.float32), (8, n))
    out = pl.pallas_call(
        _roll_probe_kernel,
        out_shape=jax.ShapeDtypeStruct((8, n), jnp.float32),
        in_specs=[pl.BlockSpec(memory_space=pltpu.MemorySpace.VMEM)],
        out_specs=pl.BlockSpec(memory_space=pltpu.MemorySpace.VMEM),
    )(x)
    first = float(out[0, 0])
    if first == float(n - 1):
        return True
    if first == 1.0:
        return False
    raise NotImplementedError(f"unexpected pltpu.roll semantics (probe={first})")


# ---------------------------------------------------------------------------
# Kernels
# ---------------------------------------------------------------------------
def _packed_decoder_kernel(x_ref, w_ref, b_ref, o_ref, *, apply_softmax: bool,
                           group: int, roll_is_jnp: bool):
    # x_ref: (TBp, P*n_in)   -- P samples packed per row (lane-dense)
    # w_ref: (P*n_in, P*n_out) block-diagonal weight (resident across grid)
    # b_ref: (1, P*n_out)      tiled bias (resident)
    # o_ref: (TBp, P*n_out)    P*n_out == 128 -> unmasked full-lane stores
    logits = jnp.dot(x_ref[...], w_ref[...],
                     preferred_element_type=jnp.float32)
    logits = logits + b_ref[...].astype(jnp.float32)

    if not apply_softmax:
        o_ref[...] = logits.astype(o_ref.dtype)
        return

    lanes = logits.shape[-1]                      # == 128 on the packed path
    lane = lax.broadcasted_iota(jnp.int32, logits.shape, 1)
    off = lane & (group - 1)                      # offset inside its segment

    def group_rotate(v, s):
        # Cyclic rotation by `s` *within* each `group`-wide lane segment,
        # built from two full-width XLU rolls + one select.  The select
        # predicate depends on the hardware roll direction (probed once).
        a = pltpu.roll(v, s, axis=1)
        b = pltpu.roll(v, (s - group) % lanes, axis=1)
        pred = (off >= s) if roll_is_jnp else (off < group - s)
        return jnp.where(pred, a, b)

    # Per-segment max broadcast to all lanes of the segment: log2(group)
    # roll+max steps on the XLU (separate slot from VALU / EUP / vst).
    m = logits
    s = 1
    while s < group:
        m = jnp.maximum(m, group_rotate(m, s))
        s *= 2

    e = jnp.exp(logits - m)

    # Per-segment sum broadcast to all lanes: one matmul with a block-diagonal
    # ones matrix (MXU is idle here, cheaper than 4 more roll+add steps).
    k_seg = lax.broadcasted_iota(jnp.int32, (lanes, lanes), 0) // group
    l_seg = lax.broadcasted_iota(jnp.int32, (lanes, lanes), 1) // group
    ones_blk = (k_seg == l_seg).astype(jnp.float32)
    denom = jnp.dot(e, ones_blk, preferred_element_type=jnp.float32)

    # Exact divide so every row sums to 1 (memory-bound kernel -> free).
    o_ref[...] = (e / denom).astype(o_ref.dtype)


def _narrow_decoder_kernel(x_ref, w_ref, b_ref, o_ref, *, apply_softmax: bool):
    # Fallback when output_size does not divide 128.
    # x_ref: (TB, n_in); w_ref: (n_out, n_in) torch layout (no host transpose);
    # b_ref: (1, n_out)
    logits = lax.dot_general(
        x_ref[...], w_ref[...],
        dimension_numbers=(((1,), (1,)), ((), ())),
        preferred_element_type=jnp.float32,
    ) + b_ref[...].astype(jnp.float32)
    if apply_softmax:
        m = jnp.max(logits, axis=-1, keepdims=True)
        e = jnp.exp(logits - m)
        logits = e / jnp.sum(e, axis=-1, keepdims=True)
    o_ref[...] = logits.astype(o_ref.dtype)


# ---------------------------------------------------------------------------
# Wrapper helpers
# ---------------------------------------------------------------------------
def _maybe_buffered_spec(shape, index_map, buffer_count):
    if buffer_count is None:
        return pl.BlockSpec(shape, index_map)
    return pl.BlockSpec(shape, index_map, pipeline_mode=pl.Buffered(buffer_count))


def _pick_rows(target_bytes, bytes_per_row, itemsize, cap, override):
    rows = override if override is not None else target_bytes // max(bytes_per_row, 1)
    align = max(8, 32 // max(itemsize, 1))        # 8 for f32, 16 for bf16
    return int(max(align, min(cap, (rows // align) * align)))


def _forward_packed(x, weight, bias, apply_softmax, block_rows, buffer_count,
                    core_parallel):
    B, n_in = x.shape
    n_out = weight.shape[0]
    p = 128 // n_out
    itemsize = x.dtype.itemsize

    # Pad batch to a multiple of the packing factor (no-op for typical B).
    b_pad = pl.cdiv(B, p) * p
    if b_pad != B:
        x = jnp.pad(x, ((0, b_pad - B), (0, 0)))
    bp = b_pad // p

    # Contiguous (free) reshape: p consecutive samples per packed row.
    x_packed = x.reshape(bp, p * n_in)

    # Block-diagonal weight / tiled bias.  These are tiny (p*n_in x 128 f32);
    # in a real model they would be built once at module init, not per call.
    w_big = jnp.kron(jnp.eye(p, dtype=weight.dtype), weight.T)   # (p*n_in, 128)
    b_big = jnp.tile(bias.astype(jnp.float32), p).reshape(1, p * n_out)

    roll_is_jnp = _roll_matches_jnp() if apply_softmax else True
    kernel = functools.partial(_packed_decoder_kernel,
                               apply_softmax=apply_softmax,
                               group=n_out, roll_is_jnp=roll_is_jnp)
    out_shape = jax.ShapeDtypeStruct((bp, p * n_out), jnp.float32)

    # Tile size (in packed rows): ~4 MiB of x+out per grid step, cap 4096
    # packed rows (= 32768 logical rows).
    per_packed_row = p * (n_in * max(itemsize, 4) + n_out * 4)
    override = None if block_rows is None else max(1, block_rows // p)
    tbp = _pick_rows(4 << 20, per_packed_row, itemsize, 4096, override)

    if bp <= tbp:
        # Single block: no grid, no pipeline bookkeeping.
        out = pl.pallas_call(
            kernel,
            out_shape=out_shape,
            in_specs=[pl.BlockSpec(memory_space=pltpu.MemorySpace.VMEM)] * 3,
            out_specs=pl.BlockSpec(memory_space=pltpu.MemorySpace.VMEM),
        )(x_packed, w_big, b_big)
    else:
        grid = (pl.cdiv(bp, tbp),)
        db_bytes = 2 * tbp * per_packed_row
        resident = w_big.size * w_big.dtype.itemsize + b_big.size * 4
        # Cap at 48 MiB: headroom below v7x's 64 MiB physical VMEM per core.
        vmem_limit = int(min(48 << 20,
                             max(32 << 20, 2 * db_bytes + resident + (4 << 20))))
        sem = (pltpu.CORE_PARALLEL,) if core_parallel else ("parallel",)
        out = pl.pallas_call(
            kernel,
            out_shape=out_shape,
            grid=grid,
            in_specs=[
                _maybe_buffered_spec((tbp, p * n_in), lambda i: (i, 0),
                                     buffer_count),
                pl.BlockSpec((p * n_in, p * n_out), lambda i: (0, 0)),  # resident
                pl.BlockSpec((1, p * n_out), lambda i: (0, 0)),         # resident
            ],
            out_specs=_maybe_buffered_spec((tbp, p * n_out), lambda i: (i, 0),
                                           buffer_count),
            compiler_params=pltpu.CompilerParams(
                dimension_semantics=sem, vmem_limit_bytes=vmem_limit),
        )(x_packed, w_big, b_big)

    out = out.reshape(b_pad, n_out)       # free contiguous reshape
    if b_pad != B:
        out = out[:B]
    return out


def _forward_narrow(x, weight, bias, apply_softmax, block_rows, buffer_count,
                    core_parallel):
    B, n_in = x.shape
    n_out = weight.shape[0]
    itemsize = x.dtype.itemsize
    b2 = bias.astype(jnp.float32).reshape(1, n_out)
    kernel = functools.partial(_narrow_decoder_kernel,
                               apply_softmax=apply_softmax)
    out_shape = jax.ShapeDtypeStruct((B, n_out), jnp.float32)

    per_row = n_in * max(itemsize, 4) + n_out * 4
    tb = _pick_rows(4 << 20, per_row, itemsize, 32768, block_rows)

    if B <= tb:
        return pl.pallas_call(
            kernel,
            out_shape=out_shape,
            in_specs=[pl.BlockSpec(memory_space=pltpu.MemorySpace.VMEM)] * 3,
            out_specs=pl.BlockSpec(memory_space=pltpu.MemorySpace.VMEM),
        )(x, weight, b2)

    grid = (pl.cdiv(B, tb),)
    db_bytes = 2 * tb * per_row
    resident = weight.size * weight.dtype.itemsize + n_out * 4
    vmem_limit = int(min(48 << 20,
                         max(32 << 20, 2 * db_bytes + resident + (4 << 20))))
    sem = (pltpu.CORE_PARALLEL,) if core_parallel else ("parallel",)
    return pl.pallas_call(
        kernel,
        out_shape=out_shape,
        grid=grid,
        in_specs=[
            _maybe_buffered_spec((tb, n_in), lambda i: (i, 0), buffer_count),
            pl.BlockSpec((n_out, n_in), lambda i: (0, 0)),   # resident weight
            pl.BlockSpec((1, n_out), lambda i: (0, 0)),      # resident bias
        ],
        out_specs=_maybe_buffered_spec((tb, n_out), lambda i: (i, 0),
                                       buffer_count),
        compiler_params=pltpu.CompilerParams(
            dimension_semantics=sem, vmem_limit_bytes=vmem_limit),
    )(x, weight, b2)


def state_decoder_forward(x, weight, bias, *, sigmoid: bool = False,
                          unpack: bool = False, block_rows: int | None = None,
                          buffer_count: int | None = None,
                          core_parallel: bool = False):
    """Pallas equivalent of StateDecoder.forward.

    Args:
      x:      (B, n_state_neurons) float32 (or an (x, _) tuple if unpack=True).
      weight: (output_size, n_state_neurons) float32 -- PyTorch Linear layout.
      bias:   (output_size,) float32.
      sigmoid: module's flag name; if True apply softmax over the last dim.
      block_rows: batch tile (logical rows) for the gridded path; None -> auto.
      buffer_count: optional pl.Buffered(k) depth on x/out (v7x DMA-latency knob).
      core_parallel: use pltpu.CORE_PARALLEL on the batch grid axis (v7x 2-TC).
    Returns:
      (B, output_size) float32.
    """
    if unpack:
        x, _ = x
    B, n_in = x.shape
    n_out, n_in_w = weight.shape
    assert n_in_w == n_in, (weight.shape, x.shape)

    # Lane-dense packed path whenever output_size divides 128 with room to
    # pack >= 2 samples per vreg row; otherwise the plain narrow kernel.
    if n_out >= 1 and 128 % n_out == 0 and 128 // n_out >= 2:
        return _forward_packed(x, weight, bias, sigmoid, block_rows,
                               buffer_count, core_parallel)
    return _forward_narrow(x, weight, bias, sigmoid, block_rows,
                           buffer_count, core_parallel)


if __name__ == "__main__":
    # Small shapes consistent with the module.
    n_state_neurons = 32
    output_size = 16
    batch = 8

    key = jax.random.PRNGKey(0)
    k_x, k_w, k_b, k_xl = jax.random.split(key, 4)

    x = jax.random.normal(k_x, (batch, n_state_neurons), dtype=jnp.float32)
    bound = 1.0 / (n_state_neurons ** 0.5)
    weight = jax.random.uniform(k_w, (output_size, n_state_neurons),
                                minval=-bound, maxval=bound, dtype=jnp.float32)
    bias = jax.random.uniform(k_b, (output_size,), minval=-bound, maxval=bound,
                              dtype=jnp.float32)

    ref_lin = x @ weight.T + bias
    ref_sm = jax.nn.softmax(ref_lin, axis=-1)

    # --- small-batch, single-block packed path (no grid) ---
    out_lin = jax.block_until_ready(
        state_decoder_forward(x, weight, bias, sigmoid=False))
    out_sm = jax.block_until_ready(
        state_decoder_forward(x, weight, bias, sigmoid=True))
    assert out_lin.shape == (batch, output_size)
    assert jnp.allclose(out_lin, ref_lin, atol=1e-4, rtol=1e-4)
    assert jnp.allclose(out_sm, ref_sm, atol=1e-3, rtol=1e-3)
    assert jnp.allclose(out_sm.sum(-1), 1.0, atol=1e-3)   # exact divide

    # --- gridded, lane-packed path (small tile forces a 4-step grid) ---
    big_b = 4096
    xl = jax.random.normal(k_xl, (big_b, n_state_neurons), dtype=jnp.float32)
    ref_big = jax.nn.softmax(xl @ weight.T + bias, axis=-1)
    out_big = jax.block_until_ready(
        state_decoder_forward(xl, weight, bias, sigmoid=True, block_rows=1024))
    assert out_big.shape == (big_b, output_size)
    assert jnp.allclose(out_big, ref_big, atol=1e-3, rtol=1e-3)

    # --- narrow fallback path (output_size does not divide 128) ---
    odd_out = 20
    w_odd = jax.random.uniform(k_w, (odd_out, n_state_neurons),
                               minval=-bound, maxval=bound, dtype=jnp.float32)
    b_odd = jax.random.uniform(k_b, (odd_out,), minval=-bound, maxval=bound,
                               dtype=jnp.float32)
    ref_odd = jax.nn.softmax(x @ w_odd.T + b_odd, axis=-1)
    out_odd = jax.block_until_ready(
        state_decoder_forward(x, w_odd, b_odd, sigmoid=True))
    assert jnp.allclose(out_odd, ref_odd, atol=1e-3, rtol=1e-3)

    print("KERNEL_OK")
</pallas_src>

<mosaic_0001>
module attributes {stable_mosaic.version = 11 : i64} {
  func.func @_packed_decoder_kernel(%arg0: memref<1x256xf32, #tpu.memory_space<vmem>>, %arg1: memref<256x128xf32, #tpu.memory_space<vmem>>, %arg2: memref<1x128xf32, #tpu.memory_space<vmem>>, %arg3: memref<1x128xf32, #tpu.memory_space<vmem>>) attributes {dimension_semantics = [], scalar_prefetch = 0 : i64, scratch_operands = 0 : i64, tpu.core_type = #tpu.core_type<tc>} {
    %c0 = arith.constant 0 : index
    %c0_0 = arith.constant 0 : index
    %0 = vector.load %arg0[%c0, %c0_0] : memref<1x256xf32, #tpu.memory_space<vmem>>, vector<1x256xf32>
    %c0_1 = arith.constant 0 : index
    %c0_2 = arith.constant 0 : index
    %1 = vector.load %arg1[%c0_1, %c0_2] : memref<256x128xf32, #tpu.memory_space<vmem>>, vector<256x128xf32>
    %cst = arith.constant dense<0.000000e+00> : vector<1x128xf32>
    %2 = tpu.matmul %0, %1, %cst {dimension_numbers = #tpu.dot_dimension_numbers<[1], [0], [0], [1], [0, 0, 1, 1], [], []>} : vector<1x256xf32>, vector<256x128xf32>, vector<1x128xf32> -> vector<1x128xf32>
    %c0_3 = arith.constant 0 : index
    %c0_4 = arith.constant 0 : index
    %3 = vector.load %arg2[%c0_3, %c0_4] : memref<1x128xf32, #tpu.memory_space<vmem>>, vector<1x128xf32>
    %4 = arith.addf %2, %3 : vector<1x128xf32>
    %c0_5 = arith.constant 0 : index
    %c0_6 = arith.constant 0 : index
    %5 = vector.load %arg3[%c0_5, %c0_6] : memref<1x128xf32, #tpu.memory_space<vmem>>, vector<1x128xf32>
    tpu.vector_store %arg3[%c0_5, %c0_6], %4 {strides = array<i32>} : memref<1x128xf32, #tpu.memory_space<vmem>>, vector<1x128xf32>,
    return
  }
}

</mosaic_0001>

<bundles_post_ra>
// kernel: tpu_custom_call.1
= control target key start
LH: loop header
LB: loop body
LE: loop exit
PB: predicated region body
PF: predicated region fallthrough
CT: control target
= control target key end

     0   :  { %8 = vsyncpa [#allocation3], 0  ;;  %s388_s0 = inlined_call_operand.hbm [shape: f32[1,256], index: 0, kind: input, shape index: {}]   ;;  %s389_s1 = inlined_call_operand.hbm [shape: f32[256,128], index: 1, kind: input, shape index: {}]   ;;  %s390_s2 = inlined_call_operand.vmem [shape: f32[1,128], index: 2, kind: input, shape index: {}]   ;;  %s391_s3 = inlined_call_operand.hbm [shape: f32[1,128], index: 3, kind: output, shape index: {}]  }
   0x1   :  { %9 = vsyncpa [#allocation6], 0 }
   0x2   :  { %10 = vsyncpa [#allocation4], 0  ;;  %s317_s12 = smov [#allocation2]   ;;  %s318_s14 = smov [#allocation5]  }
   0x3   :  { %s17_s13 = sshll.u32 %s317_s12, 4  ;;  %s26_s15 = sshll.u32 %s318_s14, 4  ;;  %s18_s13 = int_to_ptr.vmem [resolvable:$true] %s17_s13  ;;  %s342_s15 = int_to_ptr.vmem [resolvable:$true] %s26_s15 }
   0x4   :  { %s245_s18 = scalar_lea.hbm %s388_s0, 32 }
   0x5   :  { %p246_p0 = scmp.ne.s32.totalorder %s388_s0, %s245_s18  ;;  %p249_p1 = scmp.lt.u32.totalorder %s245_s18, %s388_s0 }
   0x7   :  { %p251_p2 = pnand %p249_p1, %p246_p0 }
   0x9   :  { %254 = shalt.err (!%p251_p2)
}
   0xa   :  { %s255_s23 = scalar_lea.vmem %s18_s13, 32  ;;  %p260_p4 = scmp.lt.s32.totalorder %s18_s13, %s18_s13 }
   0xb   :  { %p256_p3 = scmp.ne.s32.totalorder %s18_s13, %s255_s23  ;;  %p261_p5 = scmp.lt.s32.totalorder %s255_s23, %s255_s23 }
   0xd   :  { %p262_p6 = por %p261_p5, %p260_p4 }
   0xf   :  { %p263_p7 = pnand %p262_p6, %p256_p3 }
  0x11   :  { %266 = shalt.err (!%p263_p7)
}
  0x12   :  { %20 = dma.hbm_to_vmem [thread:$0]  %s388_s0, 32, %s18_s13, [#allocation3]  }
  0x13   :  { %s267_s28 = scalar_lea.hbm %s389_s1, 4096 }
  0x14   :  { %p268_p8 = scmp.ne.s32.totalorder %s389_s1, %s267_s28  ;;  %p271_p9 = scmp.lt.u32.totalorder %s267_s28, %s389_s1 }
  0x16   :  { %p273_p10 = pnand %p271_p9, %p268_p8 }
  0x18   :  { %276 = shalt.err (!%p273_p10)
}
  0x19   :  { %s277_s6 = scalar_lea.vmem %s342_s15, 4096  ;;  %p282_p12 = scmp.lt.s32.totalorder %s342_s15, %s342_s15 }
  0x1a   :  { %p278_p11 = scmp.ne.s32.totalorder %s342_s15, %s277_s6  ;;  %p283_p13 = scmp.lt.s32.totalorder %s277_s6, %s277_s6 }
  0x1c   :  { %p284_p0 = por %p283_p13, %p282_p12 }
  0x1e   :  { %p285_p1 = pnand %p284_p0, %p278_p11 }
  0x20   :  { %288 = shalt.err (!%p285_p1)
}
  0x21   :  { %s319_s0 = smov 128   ;;  %s320_s7 = smov 8  }
  0x22   :  { %32 = dma.hbm_to_vmem [thread:$0]  %s389_s1, 4096, %s342_s15, [#allocation6], %s319_s0, %s319_s0, %s320_s7  }
  0x23   :  { %311 = dma.done.wait [#allocation3], 32  }
  0x24   :  { %312 = vsyncadd [#allocation3], 4294967264 }
  0x25   :  { %313 = dma.done.wait [#allocation6], 4096  }
  0x26   :  { %314 = vsyncadd [#allocation6], 4294963200  ;;  %v76_v0 = vlaneseq  ;;  %v58_v1 = vld [vmem:[#allocation5 + $0x80] sm:$0xff]  ;;  %v59_v2 = vld [vmem:[#allocation5 + $0x88] sm:$0xff]  ;;  %s321_s11 = smov [#allocation7]  }
  0x27   :  { %v42_v3 = vld [vmem:[#allocation5] sm:$0xff]  ;;  %v208_v4 = vpack.c.bf16 %v59_v2, %v58_v1  ;;  %v43_v5 = vld [vmem:[#allocation5 + $0x8] sm:$0xff]  ;;  %v60_v6 = vld [vmem:[#allocation5 + $0x90] sm:$0xff]  ;;  %s163_s12 = sshll.u32 %s321_s11, 4  ;;  %s164_s12 = int_to_ptr.vmem [resolvable:$true] %s163_s12 }
  0x28   :  { %v61_v7 = vld [vmem:[#allocation5 + $0x98] sm:$0xff]  ;;  %v210_v8 = vpack.c.bf16 %v43_v5, %v42_v3  ;;  %v44_v10 = vld [vmem:[#allocation5 + $0x10] sm:$0xff]  ;;  %v62_v12 = vld [vmem:[#allocation5 + $0xa0] sm:$0xff]  ;;  %v77_v14 = vshrl.u32 %v76_v0, 7  ;;  %s289_s13 = scalar_lea.vmem %s164_s12, 16  ;;  %s293_s14 = scalar_lea.vmem %s164_s12, 32 }
  0x29   :  { %v212_v9 = vpack.c.bf16 %v61_v7, %v60_v6  ;;  %v45_v11 = vld [vmem:[#allocation5 + $0x18] sm:$0xff]  ;;  %209 = vmatprep.subr.bf16.mxu0 %v208_v4  ;;  %v63_v13 = vld [vmem:[#allocation5 + $0xa8] sm:$0xff]  ;;  %v46_v17 = vld [vmem:[#allocation5 + $0x20] sm:$0xff]  ;;  %p290_p2 = scmp.ne.s32.totalorder %s164_s12, %s289_s13  ;;  %p294_p3 = scmp.lt.s32.totalorder %s164_s12, %s164_s12 }
  0x2a   :  { %211 = vmatpush3.bf16.msra.mxu0 %v210_v8  ;;  %v214_v15 = vpack.c.bf16 %v45_v11, %v44_v10  ;;  %v216_v16 = vpack.c.bf16 %v63_v13, %v62_v12  ;;  %v47_v18 = vld [vmem:[#allocation5 + $0x28] sm:$0xff]  ;;  %v64_v19 = vld [vmem:[#allocation5 + $0xb0] sm:$0xff]  ;;  %v65_v20 = vld [vmem:[#allocation5 + $0xb8] sm:$0xff]  ;;  %v82_v21 = vsub.s32 1, %v77_v14  ;;  %v78_v52 = vsub.s32 0, %v77_v14  ;;  %p295_p4 = scmp.lt.s32.totalorder %s293_s14, %s289_s13 }
  0x2b   :  { %213 = vmatprep.subr.bf16.mxu0 %v212_v9  ;;  %v218_v22 = vpack.c.bf16 %v47_v18, %v46_v17  ;;  %v220_v23 = vpack.c.bf16 %v65_v20, %v64_v19  ;;  %v48_v24 = vld [vmem:[#allocation5 + $0x30] sm:$0xff]  ;;  %v49_v25 = vld [vmem:[#allocation5 + $0x38] sm:$0xff]  ;;  %v66_v26 = vld [vmem:[#allocation5 + $0xc0] sm:$0xff] }
  0x2c   :  { %v67_v27 = vld [vmem:[#allocation5 + $0xc8] sm:$0xff]  ;;  %v41_v28 = vld [vmem:[#allocation2] sm:$0x3]  ;;  %v222_v30 = vpack.c.bf16 %v49_v25, %v48_v24  ;;  %v50_v32 = vld [vmem:[#allocation5 + $0x40] sm:$0xff]  ;;  %p296_p5 = por %p295_p4, %p294_p3 }
  0x2d   :  { %v83_v29 = vrot.slane %v41_v28, %v82_v21  ;;  %v224_v31 = vpack.c.bf16 %v67_v27, %v66_v26  ;;  %v51_v33 = vld [vmem:[#allocation5 + $0x48] sm:$0xff]  ;;  %v68_v34 = vld [vmem:[#allocation5 + $0xd0] sm:$0xff]  ;;  %v69_v35 = vld [vmem:[#allocation5 + $0xd8] sm:$0xff]  ;;  %v79_v54 = vrot.slane %v41_v28, %v78_v52 }
  0x2e   :  { %215 = vmatpush3.bf16.msra.mxu0 %v214_v15  ;;  %v226_v36 = vpack.c.bf16 %v51_v33, %v50_v32  ;;  %v228_v37 = vpack.c.bf16 %v69_v35, %v68_v34  ;;  %v52_v38 = vld [vmem:[#allocation5 + $0x50] sm:$0xff]  ;;  %v53_v39 = vld [vmem:[#allocation5 + $0x58] sm:$0xff]  ;;  %v70_v40 = vld [vmem:[#allocation5 + $0xe0] sm:$0xff]  ;;  %p297_p6 = pnand %p296_p5, %p290_p2 }
  0x2f   :  { %217 = vmatprep.subr.bf16.mxu0 %v216_v16  ;;  %150 = vmatprep.mubr.f32.mxu0 %v83_v29  ;;  %v71_v41 = vld [vmem:[#allocation5 + $0xe8] sm:$0xff]  ;;  %v230_v42 = vpack.c.bf16 %v53_v39, %v52_v38  ;;  %v54_v44 = vld [vmem:[#allocation5 + $0x60] sm:$0xff]  ;;  %v72_v46 = vld [vmem:[#allocation5 + $0xf0] sm:$0xff] }
  0x30   :  { %v232_v43 = vpack.c.bf16 %v71_v41, %v70_v40  ;;  %v55_v45 = vld [vmem:[#allocation5 + $0x68] sm:$0xff]  ;;  %v73_v47 = vld [vmem:[#allocation5 + $0xf8] sm:$0xff]  ;;  %v56_v50 = vld [vmem:[#allocation5 + $0x70] sm:$0xff] }
  0x31   :  { %v234_v48 = vpack.c.bf16 %v55_v45, %v54_v44  ;;  %v236_v49 = vpack.c.bf16 %v73_v47, %v72_v46  ;;  %v57_v51 = vld [vmem:[#allocation5 + $0x78] sm:$0xff] }
  0x32   :  { %219 = vmatpush3.bf16.msra.mxu0 %v218_v22  ;;  %v238_v53 = vpack.c.bf16 %v57_v51, %v56_v50  ;;  %v74_v56 = vld [vmem:[%s390_s2] sm:$0x1] }
  0x33   :  { %221 = vmatprep.subr.bf16.mxu0 %v220_v23 }
  0x36   :  { %223 = vmatpush3.bf16.msra.mxu0 %v222_v30 }
  0x37   :  { %225 = vmatprep.subr.bf16.mxu0 %v224_v31 }
  0x3a   :  { %227 = vmatpush3.bf16.msra.mxu0 %v226_v36 }
  0x3b   :  { %229 = vmatprep.subr.bf16.mxu0 %v228_v37 }
  0x3e   :  { %231 = vmatpush3.bf16.msra.mxu0 %v230_v42 }
  0x3f   :  { %233 = vmatprep.subr.bf16.mxu0 %v232_v43 }
  0x42   :  { %235 = vmatpush3.bf16.msra.mxu0 %v234_v48 }
  0x43   :  { %237 = vmatprep.subr.bf16.mxu0 %v236_v49 }
  0x46   :  { %239 = vmatpush3.bf16.msra.mxu0 %v238_v53 }
  0x49   :  { %151 = vmatmul.mubr.f32.vlgmr.msra.gmra.mrb[0].mxu0 %v79_v54 }
 0x11c   :  { %v205_v55 = vpop.f32.mrb[0].mxu0 }
 0x11d   :  { %v206_v57 = vpop.f32.mrb[1].mxu0 }
 0x11e   :  { %v207_v58 = vadd.f32 %v206_v57, %v205_v55 }
 0x120   :  { %v153_v59 = vadd.f32 %v207_v58, %v74_v56 }
 0x122   :  { %156 = vst [vmem:[#allocation7] sm:$0x1] %v153_v59 }
 0x123   :  { %300 = shalt.err (!%p297_p6)
}
 0x124   :  { %s301_s17 = scalar_lea.hbm %s391_s3, 16 }
 0x125   :  { %p302_p7 = scmp.ne.s32.totalorder %s391_s3, %s301_s17  ;;  %p305_p8 = scmp.lt.u32.totalorder %s301_s17, %s391_s3 }
 0x127   :  { %p307_p9 = pnand %p305_p8, %p302_p7 }
 0x129   :  { %310 = shalt.err (!%p307_p9)
}
 0x12a   :  { %166 = dma.vmem_to_hbm [thread:$0]  %s164_s12, 16, %s391_s3, [#allocation4]  }
 0x12b   :  { %315 = dma.done.wait [#allocation4], 16  }
 0x12c   :  { %316 = vsyncadd [#allocation4], 4294967280 }
 0x12d   :  { %170 = vsyncpa [#allocation3], 1 }
 0x12e   :  { %171 = vsyncpa [#allocation6], 1 }
 0x12f   :  { %172 = vsyncpa [#allocation4], 1 }

</bundles_post_ra>
